<compile_context>
chip_gen: v5e
topology: v5e:2x2
jax: 0.10.0
libtpu: 0.0.40
codegen_flags: <defaults>
</compile_context>

<pallas_src>
import functools

import jax
import jax.numpy as jnp
from jax import lax
from jax.experimental import pallas as pl
from jax.experimental.pallas import tpu as pltpu


_NEG_BIG = -1e30  # bias for padded vocab lanes; exp() underflows to 0 in log-softmax


def _round_up(x, m):
    return ((x + m - 1) // m) * m


def _vmem_cap_bytes():
    """~85% of physical VMEM on this generation (fallback: 64 MiB)."""
    try:
        cap = int(pltpu.get_tpu_info().vmem_capacity_bytes)
    except Exception:  # pragma: no cover - conservative fallback
        cap = 64 << 20
    return int(cap * 0.85)


# ---------------------------------------------------------------------------
# Pass 1: fused GRU recurrence.  grid=(num_chunks,) "arbitrary"; each grid step
# runs up to Tc time steps in an in-kernel fori_loop, carrying the hidden state
# in VMEM scratch.  Embedding rows are gathered from HBM with a manual 2-deep
# double-buffered async copy driven by the scalar-prefetched token ids.
# ---------------------------------------------------------------------------
def _gru_recurrence_kernel(T_total,      # static python int: true sequence length
                           tok_ref,      # SMEM (Tp,) int32 token ids (scalar prefetch)
                           h0_ref,       # (1, Hp) f32   initial hidden state (resident)
                           wgx_ref,      # (Hp, 3Hp)     x-path gate weights [r|z|n] (resident)
                           wgh_ref,      # (Hp, 3Hp)     h-path gate weights [r|z|n] (resident)
                           bx_ref,       # (1, 3Hp) f32  [b_ir+b_hr | b_iz+b_hz | b_in]
                           bh_ref,       # (1, 3Hp) f32  [0 | 0 | b_hn]
                           emb_hbm,      # (V, 1, Hp)    embedding table, stays in HBM
                           hs_ref,       # out (Tc, Hp) f32  hidden state per step (this chunk)
                           h_scr,        # VMEM (1, Hp) f32  hidden state carried across chunks
                           ebuf,         # VMEM (2, 1, Hp)   double-buffered embedding rows
                           esem):        # DMA semaphores (2,)
    Hp = h0_ref.shape[-1]
    Tc = hs_ref.shape[0]
    c = pl.program_id(0)
    base = c * Tc
    steps = jnp.minimum(Tc, T_total - base)   # valid time steps in this chunk (>= 1)

    @pl.when(c == 0)
    def _():
        h_scr[...] = h0_ref[...]

    @pl.when(steps < Tc)                      # last (partial) chunk: deterministic pad rows
    def _():
        hs_ref[...] = jnp.zeros_like(hs_ref)

    def fetch(i, slot):
        pltpu.make_async_copy(emb_hbm.at[tok_ref[base + i]],
                              ebuf.at[slot], esem.at[slot]).start()

    fetch(0, 0)                               # prime the pipeline

    def step(i, h):
        slot = i & 1
        # wait for this step's embedding row
        pltpu.make_async_copy(emb_hbm.at[0], ebuf.at[slot], esem.at[slot]).wait()

        @pl.when(i + 1 < steps)               # prefetch next step's row
        def _():
            fetch(i + 1, 1 - slot)

        # embedding(token).view(1,1,-1) followed by ReLU (elementwise kept in f32)
        x = jnp.maximum(ebuf[slot].astype(jnp.float32), 0.0)            # (1, Hp)

        # Two MXU dots (no lane concatenate); gate layout [r | z | n], Hp lanes each.
        gx = jnp.dot(x.astype(wgx_ref.dtype), wgx_ref[...],
                     preferred_element_type=jnp.float32) + bx_ref[...]  # (1, 3Hp)
        gh = jnp.dot(h.astype(wgh_ref.dtype), wgh_ref[...],
                     preferred_element_type=jnp.float32) + bh_ref[...]  # (1, 3Hp)

        r = jax.nn.sigmoid(gx[:, 0:Hp] + gh[:, 0:Hp])
        z = jax.nn.sigmoid(gx[:, Hp:2 * Hp] + gh[:, Hp:2 * Hp])
        n = jnp.tanh(gx[:, 2 * Hp:3 * Hp] + r * gh[:, 2 * Hp:3 * Hp])   # b_hn inside r*(.)
        h_new = (1.0 - z) * n + z * h                                   # (1, Hp) f32

        hs_ref[pl.ds(i, 1), :] = h_new
        return h_new

    h_final = lax.fori_loop(0, steps, step, h_scr[...])
    h_scr[...] = h_final                      # carry hidden state to the next chunk


# ---------------------------------------------------------------------------
# Pass 2: batched output projection + row-wise log-softmax, tiled over T,
# full vocab width per block, "parallel" grid.
# (For very large vocab on v7x, Op would additionally be tiled with an online
#  logsumexp; not needed at these sizes.)
# ---------------------------------------------------------------------------
def _projection_kernel(hs_ref, wo_ref, bo_ref, logp_ref):
    logits = jnp.dot(hs_ref[...].astype(wo_ref.dtype), wo_ref[...],
                     preferred_element_type=jnp.float32)
    logits = logits + bo_ref[...]                                   # (Tt, Op); pads get -1e30
    m = jnp.max(logits, axis=-1, keepdims=True)
    lse = m + jnp.log(jnp.sum(jnp.exp(logits - m), axis=-1, keepdims=True))
    logp_ref[...] = (logits - lse).astype(logp_ref.dtype)


# ---------------------------------------------------------------------------
# One-time weight packing: transpose, split x/h gate paths, pad H/O to 128 lanes.
# ---------------------------------------------------------------------------
def prepare_params(raw, hidden_size, output_size, param_dtype=jnp.bfloat16):
    H, O = hidden_size, output_size
    V = raw["embedding"].shape[0]
    Hp = _round_up(H, 128)
    Op = _round_up(O, 128)

    w_ih, w_hh = raw["w_ih"], raw["w_hh"]      # (3H, H) each, PyTorch gate order [r|z|n]
    b_ih, b_hh = raw["b_ih"], raw["b_hh"]      # (3H,)

    def blk(w, k):                              # k-th (H, H) gate block
        return w[k * H:(k + 1) * H, :]

    def pack_w(w):                              # -> (Hp, 3Hp), cols [r | z | n], lane-aligned
        wp = jnp.zeros((Hp, 3 * Hp), jnp.float32)
        for k in range(3):
            wp = wp.at[0:H, k * Hp:k * Hp + H].set(blk(w, k).T)
        return wp

    w_gx = pack_w(w_ih)
    w_gh = pack_w(w_hh)

    # Bias split to match nn.GRU exactly:
    #   r = sig(Wx_r x + Wh_r h + (b_ir+b_hr)); z analogous;
    #   n = tanh(Wx_n x + b_in + r * (Wh_n h + b_hn))
    b_gx = jnp.zeros((1, 3 * Hp), jnp.float32)
    b_gx = b_gx.at[0, 0 * Hp:0 * Hp + H].set(b_ih[0:H] + b_hh[0:H])
    b_gx = b_gx.at[0, 1 * Hp:1 * Hp + H].set(b_ih[H:2 * H] + b_hh[H:2 * H])
    b_gx = b_gx.at[0, 2 * Hp:2 * Hp + H].set(b_ih[2 * H:3 * H])
    b_gh = jnp.zeros((1, 3 * Hp), jnp.float32)
    b_gh = b_gh.at[0, 2 * Hp:2 * Hp + H].set(b_hh[2 * H:3 * H])

    wo = jnp.zeros((Hp, Op), jnp.float32).at[0:H, 0:O].set(raw["w_out"].T)
    bo = jnp.full((1, Op), _NEG_BIG, jnp.float32).at[0, 0:O].set(raw["b_out"])

    # Embedding stored as (V, 1, Hp): each row is a (1, Hp) tile DMA'd straight
    # from HBM into the kernel's double buffer by token id (table never resident).
    emb = jnp.zeros((V, 1, Hp), jnp.float32).at[:, 0, 0:H].set(raw["embedding"])

    return {
        "H": H, "O": O, "Hp": Hp, "Op": Op, "V": V,
        "embedding": emb.astype(param_dtype),
        "w_gx": w_gx.astype(param_dtype),
        "w_gh": w_gh.astype(param_dtype),
        "w_out": wo.astype(param_dtype),
        "b_gx": b_gx, "b_gh": b_gh, "b_out": bo,    # biases stay f32 (tiny)
    }


def decoder_rnn_decode(tokens, hidden, prep):
    """Run T fused decoder steps (teacher-forced token sequence).

    tokens: int32 (T,) token ids, one per step
    hidden: float32 (1, 1, H) initial hidden state
    returns (log_probs (T, O), final hidden (1, 1, H))
    """
    H, O, Hp, Op = prep["H"], prep["O"], prep["Hp"], prep["Op"]
    T = int(tokens.shape[0])

    # ---------------- pass 1: recurrence ----------------
    Tc = 128 if T > 128 else _round_up(T, 8)     # time-chunk per grid step
    Tp = _round_up(T, Tc)
    n_chunks = Tp // Tc

    toks = jnp.zeros((Tp,), jnp.int32).at[:T].set(tokens.astype(jnp.int32))
    h0 = jnp.zeros((1, Hp), jnp.float32).at[:, :H].set(
        hidden.reshape(1, H).astype(jnp.float32))

    emb, wgx, wgh = prep["embedding"], prep["w_gx"], prep["w_gh"]
    bx, bh = prep["b_gx"], prep["b_gh"]
    wo, bo = prep["w_out"], prep["b_out"]
    w_isz = jnp.dtype(wgx.dtype).itemsize
    cap = _vmem_cap_bytes()

    def resident(shape):
        # Constant index_map => block DMA'd once, stays resident across the grid.
        return pl.BlockSpec(shape, lambda c, tk: tuple(0 for _ in shape))

    rec_vmem = (2 * (2 * Hp * 3 * Hp * w_isz        # gate weights (buffered alloc)
                     + 2 * 3 * Hp * 4 + Hp * 4)     # biases + h0
                + 2 * Tc * Hp * 4                   # hs output block (double-buffered)
                + Hp * 4 + 2 * Hp * w_isz           # hidden scratch + embedding buffers
                + (4 << 20))                        # compiler headroom
    rec_vmem = int(min(max(rec_vmem, 32 << 20), cap))

    hs = pl.pallas_call(
        functools.partial(_gru_recurrence_kernel, T),
        out_shape=jax.ShapeDtypeStruct((Tp, Hp), jnp.float32),
        grid_spec=pltpu.PrefetchScalarGridSpec(
            num_scalar_prefetch=1,
            grid=(n_chunks,),
            in_specs=[
                resident((1, Hp)),                       # h0
                resident((Hp, 3 * Hp)),                  # x-path gate weights
                resident((Hp, 3 * Hp)),                  # h-path gate weights
                resident((1, 3 * Hp)),                   # x-path bias
                resident((1, 3 * Hp)),                   # h-path bias
                pl.BlockSpec(memory_space=pl.ANY),       # embedding table stays in HBM
            ],
            out_specs=pl.BlockSpec((Tc, Hp), lambda c, tk: (c, 0)),
            scratch_shapes=[
                pltpu.VMEM((1, Hp), jnp.float32),        # carried hidden state
                pltpu.VMEM((2, 1, Hp), emb.dtype),       # double-buffered embedding rows
                pltpu.SemaphoreType.DMA((2,)),
            ]),
        compiler_params=pltpu.CompilerParams(
            dimension_semantics=("arbitrary",),          # hidden state carries chunk->chunk
            vmem_limit_bytes=rec_vmem),
    )(toks, h0, wgx, wgh, bx, bh, emb)

    # ---------------- pass 2: projection + log-softmax ----------------
    Tt = min(Tp, 128)                                    # Tp % Tt == 0 by construction
    proj_vmem = (2 * (Hp * Op * w_isz + Op * 4)          # wo + bo
                 + 2 * Tt * Hp * 4                       # hs blocks
                 + 2 * Tt * Op * 4                       # logp blocks
                 + (4 << 20))
    proj_vmem = int(min(max(proj_vmem, 32 << 20), cap))

    logp = pl.pallas_call(
        _projection_kernel,
        out_shape=jax.ShapeDtypeStruct((Tp, Op), jnp.float32),
        grid_spec=pltpu.PrefetchScalarGridSpec(
            num_scalar_prefetch=0,
            grid=(Tp // Tt,),
            in_specs=[
                pl.BlockSpec((Tt, Hp), lambda i: (i, 0)),
                pl.BlockSpec((Hp, Op), lambda i: (0, 0)),
                pl.BlockSpec((1, Op), lambda i: (0, 0)),
            ],
            out_specs=pl.BlockSpec((Tt, Op), lambda i: (i, 0))),
        compiler_params=pltpu.CompilerParams(
            dimension_semantics=("parallel",),           # independent rows: both v7x TCs
            vmem_limit_bytes=proj_vmem),
    )(hs, wo, bo)

    hT = hs[T - 1:T, :H].reshape(1, 1, H)
    return logp[:T, :O], hT


def decoder_rnn_step(token, hidden, prep):
    """One forward step, matching the PyTorch module's forward(input, hidden)."""
    logp, h_new = decoder_rnn_decode(token.reshape((1,)), hidden, prep)
    return logp, h_new


def _init_params(key, hidden_size, output_size):
    """Deterministic parameter init mirroring the PyTorch module's shapes."""
    ks = jax.random.split(key, 7)
    bound = 1.0 / jnp.sqrt(hidden_size)
    u = lambda k, shape: jax.random.uniform(k, shape, jnp.float32, -bound, bound)
    return {
        "embedding": jax.random.normal(ks[0], (output_size, hidden_size), jnp.float32),
        "w_ih": u(ks[1], (3 * hidden_size, hidden_size)),   # nn.GRU weight_ih_l0
        "w_hh": u(ks[2], (3 * hidden_size, hidden_size)),   # nn.GRU weight_hh_l0
        "b_ih": u(ks[3], (3 * hidden_size,)),
        "b_hh": u(ks[4], (3 * hidden_size,)),
        "w_out": u(ks[5], (output_size, hidden_size)),      # nn.Linear weight
        "b_out": u(ks[6], (output_size,)),
    }


def _reference_decode(tokens, hidden, raw):
    """Pure-JAX reference of the PyTorch forward, applied T times."""
    H = raw["w_hh"].shape[1]
    h = hidden.reshape(1, H).astype(jnp.float32)
    logps = []
    for t in range(tokens.shape[0]):
        x = raw["embedding"][tokens[t]].reshape(1, H)
        x = jnp.maximum(x, 0.0)
        gx = x @ raw["w_ih"].T + raw["b_ih"]
        gh = h @ raw["w_hh"].T + raw["b_hh"]
        r = jax.nn.sigmoid(gx[:, :H] + gh[:, :H])
        z = jax.nn.sigmoid(gx[:, H:2 * H] + gh[:, H:2 * H])
        n = jnp.tanh(gx[:, 2 * H:] + r * gh[:, 2 * H:])
        h = (1.0 - z) * n + z * h
        logits = h @ raw["w_out"].T + raw["b_out"]
        logps.append(jax.nn.log_softmax(logits, axis=1))
    return jnp.concatenate(logps, axis=0), h.reshape(1, 1, H)


if __name__ == "__main__":
    hidden_size, output_size = 32, 64
    key = jax.random.PRNGKey(0)
    raw = _init_params(key, hidden_size, output_size)

    # T = 12 decode steps (exercises the time-padding path: Tp = 16)
    tokens = jnp.array([5, 11, 3, 42, 0, 7, 63, 21, 9, 33, 2, 17], dtype=jnp.int32)
    hidden0 = jnp.zeros((1, 1, hidden_size), dtype=jnp.float32)

    # f32 weights: faithful to the PyTorch-semantics reference.
    prep32 = prepare_params(raw, hidden_size, output_size, jnp.float32)
    logp, hT = decoder_rnn_decode(tokens, hidden0, prep32)
    jax.block_until_ready((logp, hT))

    logp_ref, hT_ref = _reference_decode(tokens, hidden0, raw)
    assert logp.shape == (int(tokens.shape[0]), output_size)
    assert hT.shape == (1, 1, hidden_size)
    assert jnp.allclose(logp, logp_ref, atol=1e-4, rtol=1e-4)
    assert jnp.allclose(hT, hT_ref, atol=1e-4, rtol=1e-4)

    # Single step — same signature/semantics as the original module's forward().
    logp1, h1 = decoder_rnn_step(jnp.array([5], dtype=jnp.int32), hidden0, prep32)
    jax.block_until_ready((logp1, h1))
    assert logp1.shape == (1, output_size) and h1.shape == (1, 1, hidden_size)
    assert jnp.allclose(logp1, logp_ref[0:1], atol=1e-4, rtol=1e-4)

    # Default bf16 weight/embedding storage (f32 accumulation): halves weight
    # HBM->VMEM traffic.  Recurrence error compounds with T; loose tolerance.
    prep16 = prepare_params(raw, hidden_size, output_size)
    logp_b, hT_b = decoder_rnn_decode(tokens, hidden0, prep16)
    jax.block_until_ready((logp_b, hT_b))
    assert jnp.allclose(logp_b, logp_ref, atol=0.25, rtol=0.05)

    print("KERNEL_OK")
</pallas_src>

<mosaic_0001>
module attributes {stable_mosaic.version = 11 : i64} {
  func.func @_gru_recurrence_kernel(%arg0: i32, %arg1: memref<16xi32, #tpu.memory_space<smem>>, %arg2: memref<1x128xf32, #tpu.memory_space<vmem>>, %arg3: memref<128x384xf32, #tpu.memory_space<vmem>>, %arg4: memref<128x384xf32, #tpu.memory_space<vmem>>, %arg5: memref<1x384xf32, #tpu.memory_space<vmem>>, %arg6: memref<1x384xf32, #tpu.memory_space<vmem>>, %arg7: memref<64x1x128xf32, #tpu.memory_space<any>>, %arg8: memref<16x128xf32, #tpu.memory_space<vmem>>, %arg9: memref<1x128xf32, #tpu.memory_space<vmem>>, %arg10: memref<2x1x128xf32, #tpu.memory_space<vmem>>, %arg11: memref<2x!tpu.dma_semaphore, #tpu.memory_space<semaphore_mem>>) attributes {dimension_semantics = [#tpu.dimension_semantics<arbitrary>], iteration_bounds = array<i64: 1>, scalar_prefetch = 1 : i64, scratch_operands = 3 : i64, tpu.core_type = #tpu.core_type<tc>, window_params = [{pipeline_mode = #tpu.pipeline_mode<synchronous>, transform_indices = @transform_0, window_bounds = array<i64: 1, 128>}, {pipeline_mode = #tpu.pipeline_mode<synchronous>, transform_indices = @transform_1, window_bounds = array<i64: 128, 384>}, {pipeline_mode = #tpu.pipeline_mode<synchronous>, transform_indices = @transform_2, window_bounds = array<i64: 128, 384>}, {pipeline_mode = #tpu.pipeline_mode<synchronous>, transform_indices = @transform_3, window_bounds = array<i64: 1, 384>}, {pipeline_mode = #tpu.pipeline_mode<synchronous>, transform_indices = @transform_4, window_bounds = array<i64: 1, 384>}, {}, {transform_indices = @transform_6, window_bounds = array<i64: 16, 128>}]} {
    %c16_i32 = arith.constant 16 : i32
    %0 = arith.muli %arg0, %c16_i32 : i32
    %c12_i32 = arith.constant 12 : i32
    %1 = arith.subi %c12_i32, %0 : i32
    %c16_i32_0 = arith.constant 16 : i32
    %2 = arith.minsi %c16_i32_0, %1 : i32
    %c0_i32 = arith.constant 0 : i32
    %3 = arith.cmpi eq, %arg0, %c0_i32 : i32
    %4 = arith.extui %3 : i1 to i32
    %c0_i32_1 = arith.constant 0 : i32
    %5 = arith.cmpi ne, %4, %c0_i32_1 : i32
    scf.if %5 {
      %c0_15 = arith.constant 0 : index
      %c0_16 = arith.constant 0 : index
      %23 = vector.load %arg2[%c0_15, %c0_16] : memref<1x128xf32, #tpu.memory_space<vmem>>, vector<1x128xf32>
      %c0_17 = arith.constant 0 : index
      %c0_18 = arith.constant 0 : index
      %24 = vector.load %arg9[%c0_17, %c0_18] : memref<1x128xf32, #tpu.memory_space<vmem>>, vector<1x128xf32>
      tpu.vector_store %arg9[%c0_17, %c0_18], %23 {strides = array<i32>} : memref<1x128xf32, #tpu.memory_space<vmem>>, vector<1x128xf32>,
    } else {
    }
    %c16_i32_2 = arith.constant 16 : i32
    %6 = arith.cmpi slt, %2, %c16_i32_2 : i32
    %7 = arith.extui %6 : i1 to i32
    %c0_i32_3 = arith.constant 0 : i32
    %8 = arith.cmpi ne, %7, %c0_i32_3 : i32
    scf.if %8 {
      %cst = arith.constant 0.000000e+00 : f32
      %23 = vector.broadcast %cst : f32 to vector<16x128xf32>
      %c0_15 = arith.constant 0 : index
      %c0_16 = arith.constant 0 : index
      %24 = vector.load %arg8[%c0_15, %c0_16] : memref<16x128xf32, #tpu.memory_space<vmem>>, vector<16x128xf32>
      tpu.vector_store %arg8[%c0_15, %c0_16], %23 {strides = array<i32>} : memref<16x128xf32, #tpu.memory_space<vmem>>, vector<16x128xf32>,
    } else {
    }
    %c0_i32_4 = arith.constant 0 : i32
    %9 = arith.addi %0, %c0_i32_4 : i32
    %10 = arith.index_cast %9 : i32 to index
    %11 = memref.load %arg1[%10] : memref<16xi32, #tpu.memory_space<smem>>
    %c0_i32_5 = arith.constant 0 : i32
    %c0_i32_6 = arith.constant 0 : i32
    %c0_i32_7 = arith.constant 0 : i32
    %c0_i32_8 = arith.constant 0 : i32
    %12 = tpu.memref_slice %arg7[%11, %c0_i32_7, %c0_i32_8] : memref<64x1x128xf32, #tpu.memory_space<any>> -> memref<1x1x128xf32, #tpu.memory_space<any>>
    %13 = tpu.memref_squeeze %12 : memref<1x1x128xf32, #tpu.memory_space<any>> -> memref<1x128xf32, #tpu.memory_space<any>>
    %c0_i32_9 = arith.constant 0 : i32
    %c0_i32_10 = arith.constant 0 : i32
    %14 = tpu.memref_slice %arg10[%c0_i32_5, %c0_i32_9, %c0_i32_10] : memref<2x1x128xf32, #tpu.memory_space<vmem>> -> memref<1x1x128xf32, #tpu.memory_space<vmem>>
    %15 = tpu.memref_squeeze %14 : memref<1x1x128xf32, #tpu.memory_space<vmem>> -> memref<1x128xf32, #tpu.memory_space<vmem>>
    %16 = tpu.memref_slice %arg11[%c0_i32_6] : memref<2x!tpu.dma_semaphore, #tpu.memory_space<semaphore_mem>> -> memref<1x!tpu.dma_semaphore, #tpu.memory_space<semaphore_mem>>
    %17 = tpu.memref_squeeze %16 : memref<1x!tpu.dma_semaphore, #tpu.memory_space<semaphore_mem>> -> memref<!tpu.dma_semaphore, #tpu.memory_space<semaphore_mem>>
    tpu.enqueue_dma source(%13 : memref<1x128xf32, #tpu.memory_space<any>>) target(%15 : memref<1x128xf32, #tpu.memory_space<vmem>>) target_semaphore(%17 : memref<!tpu.dma_semaphore, #tpu.memory_space<semaphore_mem>>)
    %c0 = arith.constant 0 : index
    %c0_11 = arith.constant 0 : index
    %18 = vector.load %arg9[%c0, %c0_11] : memref<1x128xf32, #tpu.memory_space<vmem>>, vector<1x128xf32>
    %c0_i32_12 = arith.constant 0 : i32
    %19 = arith.subi %2, %c0_i32_12 : i32
    %20 = arith.addi %c0_i32_12, %19 : i32
    %c1_i32 = arith.constant 1 : i32
    %21 = scf.for %arg12 = %c0_i32_12 to %20 step %c1_i32 iter_args(%arg13 = %18) -> (vector<1x128xf32>)  : i32 {
      %c1_i32_15 = arith.constant 1 : i32
      %23 = arith.andi %arg12, %c1_i32_15 : i32
      %c0_i32_16 = arith.constant 0 : i32
      %c0_i32_17 = arith.constant 0 : i32
      %c0_i32_18 = arith.constant 0 : i32
      %24 = tpu.memref_slice %arg7[%c0_i32_16, %c0_i32_17, %c0_i32_18] : memref<64x1x128xf32, #tpu.memory_space<any>> -> memref<1x1x128xf32, #tpu.memory_space<any>>
      %25 = tpu.memref_squeeze %24 : memref<1x1x128xf32, #tpu.memory_space<any>> -> memref<1x128xf32, #tpu.memory_space<any>>
      %c0_i32_19 = arith.constant 0 : i32
      %c0_i32_20 = arith.constant 0 : i32
      %26 = tpu.memref_slice %arg10[%23, %c0_i32_19, %c0_i32_20] : memref<2x1x128xf32, #tpu.memory_space<vmem>> -> memref<1x1x128xf32, #tpu.memory_space<vmem>>
      %27 = tpu.memref_squeeze %26 : memref<1x1x128xf32, #tpu.memory_space<vmem>> -> memref<1x128xf32, #tpu.memory_space<vmem>>
      %28 = tpu.memref_slice %arg11[%23] : memref<2x!tpu.dma_semaphore, #tpu.memory_space<semaphore_mem>> -> memref<1x!tpu.dma_semaphore, #tpu.memory_space<semaphore_mem>>
      %29 = tpu.memref_squeeze %28 : memref<1x!tpu.dma_semaphore, #tpu.memory_space<semaphore_mem>> -> memref<!tpu.dma_semaphore, #tpu.memory_space<semaphore_mem>>
      tpu.wait_dma2 semaphore(%29 : memref<!tpu.dma_semaphore, #tpu.memory_space<semaphore_mem>>) src(%25 : memref<1x128xf32, #tpu.memory_space<any>>) dst(%27 : memref<1x128xf32, #tpu.memory_space<vmem>>)
      %c1_i32_21 = arith.constant 1 : i32
      %30 = arith.addi %arg12, %c1_i32_21 : i32
      %31 = arith.cmpi slt, %30, %2 : i32
      %32 = arith.extui %31 : i1 to i32
      %c0_i32_22 = arith.constant 0 : i32
      %33 = arith.cmpi ne, %32, %c0_i32_22 : i32
      scf.if %33 {
        %c1_i32_39 = arith.constant 1 : i32
        %75 = arith.addi %arg12, %c1_i32_39 : i32
        %c1_i32_40 = arith.constant 1 : i32
        %76 = arith.subi %c1_i32_40, %23 : i32
        %77 = arith.addi %0, %75 : i32
        %78 = arith.index_cast %77 : i32 to index
        %79 = memref.load %arg1[%78] : memref<16xi32, #tpu.memory_space<smem>>
        %c0_i32_41 = arith.constant 0 : i32
        %c0_i32_42 = arith.constant 0 : i32
        %80 = tpu.memref_slice %arg7[%79, %c0_i32_41, %c0_i32_42] : memref<64x1x128xf32, #tpu.memory_space<any>> -> memref<1x1x128xf32, #tpu.memory_space<any>>
        %81 = tpu.memref_squeeze %80 : memref<1x1x128xf32, #tpu.memory_space<any>> -> memref<1x128xf32, #tpu.memory_space<any>>
        %c0_i32_43 = arith.constant 0 : i32
        %c0_i32_44 = arith.constant 0 : i32
        %82 = tpu.memref_slice %arg10[%76, %c0_i32_43, %c0_i32_44] : memref<2x1x128xf32, #tpu.memory_space<vmem>> -> memref<1x1x128xf32, #tpu.memory_space<vmem>>
        %83 = tpu.memref_squeeze %82 : memref<1x1x128xf32, #tpu.memory_space<vmem>> -> memref<1x128xf32, #tpu.memory_space<vmem>>
        %84 = tpu.memref_slice %arg11[%76] : memref<2x!tpu.dma_semaphore, #tpu.memory_space<semaphore_mem>> -> memref<1x!tpu.dma_semaphore, #tpu.memory_space<semaphore_mem>>
        %85 = tpu.memref_squeeze %84 : memref<1x!tpu.dma_semaphore, #tpu.memory_space<semaphore_mem>> -> memref<!tpu.dma_semaphore, #tpu.memory_space<semaphore_mem>>
        tpu.enqueue_dma source(%81 : memref<1x128xf32, #tpu.memory_space<any>>) target(%83 : memref<1x128xf32, #tpu.memory_space<vmem>>) target_semaphore(%85 : memref<!tpu.dma_semaphore, #tpu.memory_space<semaphore_mem>>)
      } else {
      }
      %34 = arith.index_cast %23 : i32 to index
      %c0_23 = arith.constant 0 : index
      %c0_24 = arith.constant 0 : index
      %35 = vector.load %arg10[%34, %c0_23, %c0_24] : memref<2x1x128xf32, #tpu.memory_space<vmem>>, vector<1x1x128xf32>
      %36 = vector.shape_cast %35 : vector<1x1x128xf32> to vector<1x128xf32>
      %cst = arith.constant 0.000000e+00 : f32
      %37 = vector.broadcast %cst : f32 to vector<1x128xf32>
      %38 = arith.maximumf %36, %37 : vector<1x128xf32>
      %c0_25 = arith.constant 0 : index
      %c0_26 = arith.constant 0 : index
      %39 = vector.load %arg3[%c0_25, %c0_26] : memref<128x384xf32, #tpu.memory_space<vmem>>, vector<128x384xf32>
      %cst_27 = arith.constant dense<0.000000e+00> : vector<1x384xf32>
      %40 = tpu.matmul %38, %39, %cst_27 {dimension_numbers = #tpu.dot_dimension_numbers<[1], [0], [0], [1], [0, 0, 1, 1], [], []>} : vector<1x128xf32>, vector<128x384xf32>, vector<1x384xf32> -> vector<1x384xf32>
      %c0_28 = arith.constant 0 : index
      %c0_29 = arith.constant 0 : index
      %41 = vector.load %arg5[%c0_28, %c0_29] : memref<1x384xf32, #tpu.memory_space<vmem>>, vector<1x384xf32>
      %42 = arith.addf %40, %41 : vector<1x384xf32>
      %c0_30 = arith.constant 0 : index
      %c0_31 = arith.constant 0 : index
      %43 = vector.load %arg4[%c0_30, %c0_31] : memref<128x384xf32, #tpu.memory_space<vmem>>, vector<128x384xf32>
      %cst_32 = arith.constant dense<0.000000e+00> : vector<1x384xf32>
      %44 = tpu.matmul %arg13, %43, %cst_32 {dimension_numbers = #tpu.dot_dimension_numbers<[1], [0], [0], [1], [0, 0, 1, 1], [], []>} : vector<1x128xf32>, vector<128x384xf32>, vector<1x384xf32> -> vector<1x384xf32>
      %c0_33 = arith.constant 0 : index
      %c0_34 = arith.constant 0 : index
      %45 = vector.load %arg6[%c0_33, %c0_34] : memref<1x384xf32, #tpu.memory_space<vmem>>, vector<1x384xf32>
      %46 = arith.addf %44, %45 : vector<1x384xf32>
      %47 = vector.extract_strided_slice %42 {offsets = [0, 0], sizes = [1, 128], strides = [1, 1]} : vector<1x384xf32> to vector<1x128xf32>
      %48 = vector.extract_strided_slice %46 {offsets = [0, 0], sizes = [1, 128], strides = [1, 1]} : vector<1x384xf32> to vector<1x128xf32>
      %49 = arith.addf %47, %48 : vector<1x128xf32>
      %50 = arith.negf %49 : vector<1x128xf32>
      %51 = math.exp %50 : vector<1x128xf32>
      %cst_35 = arith.constant 1.000000e+00 : f32
      %52 = vector.broadcast %cst_35 : f32 to vector<1x128xf32>
      %53 = arith.addf %52, %51 : vector<1x128xf32>
      %54 = arith.divf %52, %53 : vector<1x128xf32>
      %55 = vector.extract_strided_slice %42 {offsets = [0, 128], sizes = [1, 128], strides = [1, 1]} : vector<1x384xf32> to vector<1x128xf32>
      %56 = vector.extract_strided_slice %46 {offsets = [0, 128], sizes = [1, 128], strides = [1, 1]} : vector<1x384xf32> to vector<1x128xf32>
      %57 = arith.addf %55, %56 : vector<1x128xf32>
      %58 = arith.negf %57 : vector<1x128xf32>
      %59 = math.exp %58 : vector<1x128xf32>
      %cst_36 = arith.constant 1.000000e+00 : f32
      %60 = vector.broadcast %cst_36 : f32 to vector<1x128xf32>
      %61 = arith.addf %60, %59 : vector<1x128xf32>
      %62 = arith.divf %60, %61 : vector<1x128xf32>
      %63 = vector.extract_strided_slice %42 {offsets = [0, 256], sizes = [1, 128], strides = [1, 1]} : vector<1x384xf32> to vector<1x128xf32>
      %64 = vector.extract_strided_slice %46 {offsets = [0, 256], sizes = [1, 128], strides = [1, 1]} : vector<1x384xf32> to vector<1x128xf32>
      %65 = arith.mulf %54, %64 : vector<1x128xf32>
      %66 = arith.addf %63, %65 : vector<1x128xf32>
      %67 = math.tanh %66 : vector<1x128xf32>
      %cst_37 = arith.constant 1.000000e+00 : f32
      %68 = vector.broadcast %cst_37 : f32 to vector<1x128xf32>
      %69 = arith.subf %68, %62 : vector<1x128xf32>
      %70 = arith.mulf %69, %67 : vector<1x128xf32>
      %71 = arith.mulf %62, %arg13 : vector<1x128xf32>
      %72 = arith.addf %70, %71 : vector<1x128xf32>
      %73 = arith.index_cast %arg12 : i32 to index
      %c0_38 = arith.constant 0 : index
      %74 = vector.load %arg8[%73, %c0_38] : memref<16x128xf32, #tpu.memory_space<vmem>>, vector<1x128xf32>
      tpu.vector_store %arg8[%73, %c0_38], %72 {strides = array<i32>} : memref<16x128xf32, #tpu.memory_space<vmem>>, vector<1x128xf32>,
      scf.yield %72 : vector<1x128xf32>
    }
    %c0_13 = arith.constant 0 : index
    %c0_14 = arith.constant 0 : index
    %22 = vector.load %arg9[%c0_13, %c0_14] : memref<1x128xf32, #tpu.memory_space<vmem>>, vector<1x128xf32>
    tpu.vector_store %arg9[%c0_13, %c0_14], %21 {strides = array<i32>} : memref<1x128xf32, #tpu.memory_space<vmem>>, vector<1x128xf32>,
    return
  }
  func.func @transform_0(%arg0: i32, %arg1: memref<16xi32, #tpu.memory_space<smem>>) -> (i32, i32) {
    %c0_i32 = arith.constant 0 : i32
    %c0_i32_0 = arith.constant 0 : i32
    %c0_i32_1 = arith.constant 0 : i32
    return %c0_i32, %c0_i32_0 : i32, i32
  }
  func.func @transform_1(%arg0: i32, %arg1: memref<16xi32, #tpu.memory_space<smem>>) -> (i32, i32) {
    %c0_i32 = arith.constant 0 : i32
    %c0_i32_0 = arith.constant 0 : i32
    %c0_i32_1 = arith.constant 0 : i32
    return %c0_i32, %c0_i32_0 : i32, i32
  }
  func.func @transform_2(%arg0: i32, %arg1: memref<16xi32, #tpu.memory_space<smem>>) -> (i32, i32) {
    %c0_i32 = arith.constant 0 : i32
    %c0_i32_0 = arith.constant 0 : i32
    %c0_i32_1 = arith.constant 0 : i32
    return %c0_i32, %c0_i32_0 : i32, i32
  }
  func.func @transform_3(%arg0: i32, %arg1: memref<16xi32, #tpu.memory_space<smem>>) -> (i32, i32) {
    %c0_i32 = arith.constant 0 : i32
    %c0_i32_0 = arith.constant 0 : i32
    %c0_i32_1 = arith.constant 0 : i32
    return %c0_i32, %c0_i32_0 : i32, i32
  }
  func.func @transform_4(%arg0: i32, %arg1: memref<16xi32, #tpu.memory_space<smem>>) -> (i32, i32) {
    %c0_i32 = arith.constant 0 : i32
    %c0_i32_0 = arith.constant 0 : i32
    %c0_i32_1 = arith.constant 0 : i32
    return %c0_i32, %c0_i32_0 : i32, i32
  }
  func.func @transform_6(%arg0: i32, %arg1: memref<16xi32, #tpu.memory_space<smem>>) -> (i32, i32) {
    %c0_i32 = arith.constant 0 : i32
    %c0_i32_0 = arith.constant 0 : i32
    return %arg0, %c0_i32 : i32, i32
  }
}

</mosaic_0001>

<bundles_post_ra>
// kernel: tpu_custom_call.1
= control target key start
LH: loop header
LB: loop body
LE: loop exit
PB: predicated region body
PF: predicated region fallthrough
CT: control target
= control target key end

     0   :  { %s752_s27 = smov [#allocation6]   ;;  %s901_s0 = inlined_call_operand.hbm [shape: s32[16], index: 0, kind: input, shape index: {}]   ;;  %s902_s1 = inlined_call_operand.hbm [shape: f32[1,128], index: 1, kind: input, shape index: {}]   ;;  %s903_s2 = inlined_call_operand.hbm [shape: f32[128,384], index: 2, kind: input, shape index: {}]   ;;  %s904_s3 = inlined_call_operand.hbm [shape: f32[128,384], index: 3, kind: input, shape index: {}]   ;;  %s905_s4 = inlined_call_operand.vmem [shape: f32[1,384], index: 4, kind: input, shape index: {}]   ;;  %s906_s5 = inlined_call_operand.hbm [shape: f32[1,384], index: 5, kind: input, shape index: {}]   ;;  %s907_s6 = inlined_call_operand.hbm [shape: f32[64,1,128], index: 6, kind: input, shape index: {}]   ;;  %s908_s7 = inlined_call_operand.hbm [shape: f32[16,128], index: 7, kind: output, shape index: {}]  }
   0x1   :  { %s13_s26 = sshll.u32 %s901_s0, 4  ;;  %s14_s26 = int_to_ptr.hbm [resolvable:$true] %s13_s26 }
   0x2   :  { %16 = dma.hbm_to_smem %s14_s26, 16, %s752_s27, [#allocation5] }
   0x3   :  { %732 = dma.done.wait [#allocation5], 16 }
   0x4   :  { %733 = vsyncadd [#allocation5], 4294967280 }
   0x5   :  { %19 = sfence }
   0x6   :  { %20 = vsyncpa [#allocation8], 0 }
   0x7   :  { %21 = vsyncpa [#allocation11], 0 }
   0x8   :  { %22 = vsyncpa [#allocation14], 0  ;;  %s39_s30 = sshll.u32 %s903_s2, 4  ;;  %s40_s30 = int_to_ptr.hbm [resolvable:$true] %s39_s30 }
   0x9   :  { %23 = vsyncpa [#allocation9], 0  ;;  %s753_s8 = smov [#allocation10]   ;;  %s29_s11 = sshll.u32 %s902_s1, 4  ;;  %s30_s11 = int_to_ptr.hbm [resolvable:$true] %s29_s11 }
   0xa   :  { %s41_s9 = sshll.u32 %s753_s8, 4  ;;  %s754_s12 = smov 384   ;;  %s42_s9 = int_to_ptr.vmem [resolvable:$true] %s41_s9 }
   0xb   :  { %s755_s13 = smov 24   ;;  %s756_s14 = smov [#allocation7]  }
   0xc   :  { %47 = dma.hbm_to_vmem [thread:$0]  %s40_s30, 6144, %s42_s9, [#allocation11], %s754_s12, %s754_s12, %s755_s13  }
   0xd   :  { %s31_s15 = sshll.u32 %s756_s14, 4  ;;  %s52_s18 = sshll.u32 %s904_s3, 4  ;;  %s32_s15 = int_to_ptr.vmem [resolvable:$true] %s31_s15  ;;  %s53_s18 = int_to_ptr.hbm [resolvable:$true] %s52_s18 }
   0xe   :  { %34 = dma.hbm_to_vmem [thread:$0]  %s30_s11, 16, %s32_s15, [#allocation8]  }
   0xf   :  { %s68_s20 = sshll.u32 %s906_s5, 4  ;;  %s757_s21 = smov [#allocation12]   ;;  %s69_s20 = int_to_ptr.hbm [resolvable:$true] %s68_s20 }
  0x10   :  { %s54_s22 = sshll.u32 %s757_s21, 4  ;;  %s758_s1 = smov [#allocation13]   ;;  %s55_s22 = int_to_ptr.vmem [resolvable:$true] %s54_s22 }
  0x11   :  { %60 = dma.hbm_to_vmem [thread:$0]  %s53_s18, 6144, %s55_s22, [#allocation11], %s754_s12, %s754_s12, %s755_s13  }
  0x12   :  { %s70_s23 = sshll.u32 %s758_s1, 4  ;;  %s71_s23 = int_to_ptr.vmem [resolvable:$true] %s70_s23 }
  0x13   :  { %73 = dma.hbm_to_vmem [thread:$0]  %s69_s20, 48, %s71_s23, [#allocation14]  }
  0x14   :  { %734 = dma.done.wait [#allocation8], 16  }
  0x15   :  { %735 = vsyncadd [#allocation8], 4294967280 }
  0x16   :  { %736 = dma.done.wait [#allocation11], 12288  }
  0x17   :  { %737 = vsyncadd [#allocation11], 4294955008 }
  0x18   :  { %738 = dma.done.wait [#allocation14], 48  }
  0x19   :  { %739 = vsyncadd [#allocation14], 4294967248  ;;  %v759_v0 = vmov 0.0   ;;  %s106_s3 = sld [smem:[#allocation6]]  ;;  %s760_s5 = smov [#allocation3]  }
  0x1a   :  { %104 = vst [vmem:[#allocation15] sm:$0xff] %v759_v0  ;;  %s117_s24 = sshll.u32 %s760_s5, 4  ;;  %v98_v1 = vld [vmem:[#allocation7] sm:$0x1]  ;;  %s652_s10 = scalar_lea.hbm %s907_s6, 64  ;;  %s118_s24 = int_to_ptr.vmem [resolvable:$true] %s117_s24 }
  0x1b   :  { %105 = vst [vmem:[#allocation15 + $0x8] sm:$0xff] %v759_v0 }
  0x1c   :  { %99 = vst [vmem:[#allocation2] sm:$0x1] %v98_v1 }
  0x1f   :  { %s107_s27 = scalar_lea.hbm %s907_s6, %s106_s3 }
  0x20   :  { %s115_s28 = sshll.u32 %s107_s27, 4  ;;  %s116_s28 = int_to_ptr.hbm [resolvable:$true] %s115_s28 }
  0x21   :  { %s648_s29 = sshra.s32 %s116_s28, 4  ;;  %s649_s29 = int_to_ptr.hbm [resolvable:$true] %s648_s29 }
  0x22   :  { %s650_s30 = scalar_lea.hbm %s649_s29, 1  ;;  %p653_p1 = scmp.lt.s32.totalorder %s649_s29, %s907_s6 }
  0x23   :  { %p651_p0 = scmp.ne.s32.totalorder %s649_s29, %s650_s30  ;;  %p654_p2 = scmp.lt.s32.totalorder %s652_s10, %s650_s30 }
  0x25   :  { %p655_p3 = por %p654_p2, %p653_p1 }
  0x27   :  { %p656_p4 = pnand %p655_p3, %p651_p0 }
  0x29   :  { %659 = shalt.err (!%p656_p4)  }
  0x2a   :  { %120 = dma.hbm_to_vmem [thread:$0]  %s116_s28, 16, %s118_s24, [#allocation4]  ;;  %v121_v2 = vld [vmem:[#allocation2] sm:$0x1]  }
  0x2b   :  { %s834_s14 = smov 0  }
  0x2c LB: > { %s843_s15 = sand.u32 1, %s750_s14  ;;  %s750_s14 = sphi %s834_s14, %s910_s14   ;;  %v746_v2 = vphi %v121_v2, %v909_v2  }
  0x2d   : > { %s130_s16 = scalar_lea.vmem [#allocation3], %s843_s15  ;;  %s131_s17 = scalar_lea.sflag [#allocation4], %s843_s15 }
  0x2e   : > { %740 = dma.done.wait %s131_s17, 16 }
  0x2f   : > { %741 = vsyncadd %s131_s17, 4294967280  ;;  %s848_s18 = sadd.s32 1, %s750_s14   ;;  %s140_s2 = ssub.s32 1, %s843_s15  ;;  %v206_v3 = vld [vmem:[#allocation10 + $0x168] sm:$0xff]  ;;  %v203_v4 = vld [vmem:[#allocation10 + $0x150] sm:$0xff] }
  0x30   : > { %p492_p5 = scmp.ge.s32.totalorder %s848_s18, 12  ;;  %p501_p6 = scmp.lt.s32.totalorder %s848_s18, 12  ;;  %v322_v5 = vld [vmem:[#allocation12 + $0x168] sm:$0xff]  ;;  %217 = vmatpush.msra.mxu0 %v206_v3  ;;  %v319_v6 = vld [vmem:[#allocation12 + $0x150] sm:$0xff]  ;;  %v200_v7 = vld [vmem:[#allocation10 + $0x138] sm:$0xff] }
  0x31   : > { %333 = vmatpush.msra.mxu3 %v322_v5  ;;  %v316_v8 = vld [vmem:[#allocation12 + $0x138] sm:$0xff]  ;;  %v207_v9 = vld [vmem:[#allocation10 + $0x170] sm:$0xff]  ;;  %s144_s22 = scalar_lea.vmem [#allocation3], %s140_s2  ;;  %v197_v11 = vld [vmem:[#allocation10 + $0x120] sm:$0xff]  ;;  %s145_s25 = scalar_lea.sflag [#allocation4], %s140_s2 }
  0x32   : > { %s498_s19 = scalar_select %p501_p6, [#allocation6], [#allocation22]  ;;  %218 = vmatpush.msra.mxu0 %v203_v4  ;;  %v204_v10 = vld [vmem:[#allocation10 + $0x158] sm:$0xff]  ;;  %237 = vmatpush.msra.mxu1 %v207_v9  ;;  %v313_v12 = vld [vmem:[#allocation12 + $0x120] sm:$0xff]  ;;  %v194_v14 = vld [vmem:[#allocation10 + $0x108] sm:$0xff] }
  0x33   : > { %s499_s20 = scalar_select %p501_p6, %s848_s18, 0  ;;  %334 = vmatpush.msra.mxu3 %v319_v6  ;;  %v201_v13 = vld [vmem:[#allocation10 + $0x140] sm:$0xff]  ;;  %v310_v15 = vld [vmem:[#allocation12 + $0x108] sm:$0xff]  ;;  %v191_v17 = vld [vmem:[#allocation10 + $0xf0] sm:$0xff] }
  0x34   : > { %s155_s1 = sshll.u32 %s144_s22, 4  ;;  %219 = vmatpush.msra.mxu0 %v200_v7  ;;  %238 = vmatpush.msra.mxu1 %v204_v10  ;;  %v198_v16 = vld [vmem:[#allocation10 + $0x128] sm:$0xff]  ;;  %v307_v18 = vld [vmem:[#allocation12 + $0xf0] sm:$0xff]  ;;  %s156_s1 = int_to_ptr.vmem [resolvable:$true] %s155_s1 }
  0x35   : > { %s142_s21 = sld [smem:[%s498_s19 + %s499_s20]]  ;;  %335 = vmatpush.msra.mxu3 %v316_v8 }
  0x36   : > { %220 = vmatpush.msra.mxu0 %v197_v11  ;;  %239 = vmatpush.msra.mxu1 %v201_v13 }
  0x37   : > { %336 = vmatpush.msra.mxu3 %v313_v12 }
  0x3b   : > { %s143_s5 = scalar_lea.hbm %s907_s6, %s142_s21 }
  0x3c   : > { %s153_s24 = sshll.u32 %s143_s5, 4  ;;  %s154_s24 = int_to_ptr.hbm [resolvable:$true] %s153_s24 }
  0x3d   : > { %s672_s26 = sshra.s32 %s154_s24, 4  ;;  %s673_s26 = int_to_ptr.hbm [resolvable:$true] %s672_s26 }
  0x3e   : > { %s674_s27 = scalar_lea.hbm %s673_s26, 1  ;;  %p679_p10 = scmp.lt.s32.totalorder %s673_s26, %s907_s6 }
  0x3f   : > { %p675_p7 = scmp.ne.s32.totalorder %s673_s26, %s674_s27  ;;  %p680_p11 = scmp.lt.s32.totalorder %s652_s10, %s674_s27 }
  0x41   : > { %p676_p8 = pnand %p675_p7, %p501_p6  ;;  %p681_p12 = por %p680_p11, %p679_p10 }
  0x43   : > { %p677_p9 = pneg %p676_p8 }
  0x45   : > { %p682_p13 = pnand %p681_p12, %p677_p9 }
  0x47   : > { %685 = shalt.err (!%p682_p13)  }
  0x48   : > { %500 = dma.hbm_to_vmem [thread:$0]  (%p501_p6), %s154_s24, 16, %s156_s1, %s145_s25  ;;  %221 = vmatpush.msra.mxu0 %v194_v14  ;;  %337 = vmatpush.msra.mxu3 %v310_v15  ;;  %v195_v19 = vld [vmem:[#allocation10 + $0x110] sm:$0xff]  ;;  %v188_v20 = vld [vmem:[#allocation10 + $0xd8] sm:$0xff]  ;;  %v185_v23 = vld [vmem:[#allocation10 + $0xc0] sm:$0xff] }
  0x49   : > { %240 = vmatpush.msra.mxu1 %v198_v16  ;;  %v304_v21 = vld [vmem:[#allocation12 + $0xd8] sm:$0xff]  ;;  %v301_v24 = vld [vmem:[#allocation12 + $0xc0] sm:$0xff]  ;;  %v182_v26 = vld [vmem:[#allocation10 + $0xa8] sm:$0xff]  ;;  %s440_s11 = scalar_lea.vmem [#allocation15], %s750_s14  ;;  %s910_s14 = smov %s848_s18 }
  0x4a   : > { %222 = vmatpush.msra.mxu0 %v191_v17  ;;  %338 = vmatpush.msra.mxu3 %v307_v18  ;;  %v192_v22 = vld [vmem:[#allocation10 + $0xf8] sm:$0xff]  ;;  %v189_v25 = vld [vmem:[#allocation10 + $0xe0] sm:$0xff]  ;;  %v298_v27 = vld [vmem:[#allocation12 + $0xa8] sm:$0xff]  ;;  %s449_s15 = sshll.u32 (%p492_p5), %s908_s7, 4  ;;  %s762_s2 = smov (%p492_p5), 128   ;;  %s450_s15 = int_to_ptr.hbm [resolvable:$true] %s449_s15 }
  0x4b   : > { %241 = vmatpush.msra.mxu1 %v195_v19  ;;  %v186_v28 = vld [vmem:[#allocation10 + $0xc8] sm:$0xff]  ;;  %v179_v29 = vld [vmem:[#allocation10 + $0x90] sm:$0xff]  ;;  %v208_v31 = vld [vmem:[#allocation10 + $0x178] sm:$0xff]  ;;  %s763_s14 = smov (%p492_p5), 8  }
  0x4c   : > { %223 = vmatpush.msra.mxu0 %v188_v20  ;;  %339 = vmatpush.msra.mxu3 %v304_v21  ;;  %v295_v30 = vld [vmem:[#allocation12 + $0x90] sm:$0xff]  ;;  %v205_v33 = vld [vmem:[#allocation10 + $0x160] sm:$0xff]  ;;  %v176_v34 = vld [vmem:[#allocation10 + $0x78] sm:$0xff] }
  0x4d   : > { %242 = vmatpush.msra.mxu1 %v192_v22  ;;  %v183_v32 = vld [vmem:[#allocation10 + $0xb0] sm:$0xff]  ;;  %v292_v35 = vld [vmem:[#allocation12 + $0x78] sm:$0xff]  ;;  %257 = vmatpush.msra.mxu2 %v208_v31  ;;  %v202_v37 = vld [vmem:[#allocation10 + $0x148] sm:$0xff] }
  0x4e   : > { %224 = vmatpush.msra.mxu0 %v185_v23  ;;  %340 = vmatpush.msra.mxu3 %v301_v24  ;;  %v180_v36 = vld [vmem:[#allocation10 + $0x98] sm:$0xff]  ;;  %v173_v38 = vld [vmem:[#allocation10 + $0x60] sm:$0xff]  ;;  %v199_v41 = vld [vmem:[#allocation10 + $0x130] sm:$0xff] }
  0x4f   : > { %243 = vmatpush.msra.mxu1 %v189_v25  ;;  %v289_v39 = vld [vmem:[#allocation12 + $0x60] sm:$0xff]  ;;  %258 = vmatpush.msra.mxu2 %v205_v33  ;;  %v170_v42 = vld [vmem:[#allocation10 + $0x48] sm:$0xff]  ;;  %v196_v45 = vld [vmem:[#allocation10 + $0x118] sm:$0xff] }
  0x50   : > { %225 = vmatpush.msra.mxu0 %v182_v26  ;;  %341 = vmatpush.msra.mxu3 %v298_v27  ;;  %v177_v40 = vld [vmem:[#allocation10 + $0x80] sm:$0xff]  ;;  %v286_v43 = vld [vmem:[#allocation12 + $0x48] sm:$0xff]  ;;  %v167_v46 = vld [vmem:[#allocation10 + $0x30] sm:$0xff] }
  0x51   : > { %244 = vmatpush.msra.mxu1 %v186_v28  ;;  %259 = vmatpush.msra.mxu2 %v202_v37  ;;  %v174_v44 = vld [vmem:[#allocation10 + $0x68] sm:$0xff]  ;;  %v283_v47 = vld [vmem:[#allocation12 + $0x30] sm:$0xff]  ;;  %v193_v49 = vld [vmem:[#allocation10 + $0x100] sm:$0xff] }
  0x52   : > { %226 = vmatpush.msra.mxu0 %v179_v29  ;;  %342 = vmatpush.msra.mxu3 %v295_v30  ;;  %v171_v48 = vld [vmem:[#allocation10 + $0x50] sm:$0xff]  ;;  %v164_v50 = vld [vmem:[#allocation10 + $0x18] sm:$0xff]  ;;  %v190_v54 = vld [vmem:[#allocation10 + $0xe8] sm:$0xff] }
  0x53   : > { %245 = vmatpush.msra.mxu1 %v183_v32  ;;  %260 = vmatpush.msra.mxu2 %v199_v41  ;;  %v280_v51 = vld [vmem:[#allocation12 + $0x18] sm:$0xff]  ;;  %v159_v52 = vld [vmem:[%s130_s16] sm:$0x1]  ;;  %v161_v55 = vld [vmem:[#allocation10] sm:$0xff]  ;;  %s761_s16 = smov (%p492_p5), [#allocation15]  }
  0x54   : > { %227 = vmatpush.msra.mxu0 %v176_v34  ;;  %343 = vmatpush.msra.mxu3 %v292_v35  ;;  %v168_v53 = vld [vmem:[#allocation10 + $0x38] sm:$0xff]  ;;  %v277_v56 = vld [vmem:[#allocation12] sm:$0xff]  ;;  %v323_v57 = vld [vmem:[#allocation12 + $0x170] sm:$0xff]  ;;  %v878_v58 = vmax.f32 %v159_v52, 0.0  ;;  %s447_s17 = sshll.u32 (%p492_p5), %s761_s16, 4  ;;  %s448_s17 = int_to_ptr.vmem [resolvable:$true] %s447_s17 }
  0x55   : > { %246 = vmatpush.msra.mxu1 %v180_v36  ;;  %261 = vmatpush.msra.mxu2 %v196_v45  ;;  %v165_v59 = vld [vmem:[#allocation10 + $0x20] sm:$0xff]  ;;  %v320_v60 = vld [vmem:[#allocation12 + $0x158] sm:$0xff]  ;;  %v187_v61 = vld [vmem:[#allocation10 + $0xd0] sm:$0xff] }
  0x56   : > { %228 = vmatpush.msra.mxu0 %v173_v38  ;;  %344 = vmatpush.msra.mxu3 %v289_v39  ;;  %v162_v62 = vld [vmem:[#allocation10 + $0x8] sm:$0xff]  ;;  %v317_v63 = vld [vmem:[#allocation12 + $0x140] sm:$0xff]  ;;  %v324_v0 = vld [vmem:[#allocation12 + $0x178] sm:$0xff] }
  0x57   : > { %247 = vmatpush.msra.mxu1 %v177_v40  ;;  %262 = vmatpush.msra.mxu2 %v193_v49  ;;  %v184_v1 = vld [vmem:[#allocation10 + $0xb8] sm:$0xff]  ;;  %v314_v3 = vld [vmem:[#allocation12 + $0x128] sm:$0xff]  ;;  %v321_v4 = vld [vmem:[#allocation12 + $0x160] sm:$0xff] }
  0x58   : > { %229 = vmatpush.msra.mxu0 %v170_v42  ;;  %345 = vmatpush.msra.mxu3 %v286_v43  ;;  %v181_v5 = vld [vmem:[#allocation10 + $0xa0] sm:$0xff]  ;;  %v311_v6 = vld [vmem:[#allocation12 + $0x110] sm:$0xff]  ;;  %v318_v7 = vld [vmem:[#allocation12 + $0x148] sm:$0xff] }
  0x59   : > { %248 = vmatpush.msra.mxu1 %v174_v44  ;;  %263 = vmatpush.msra.mxu2 %v190_v54  ;;  %v178_v8 = vld [vmem:[#allocation10 + $0x88] sm:$0xff]  ;;  %v308_v9 = vld [vmem:[#allocation12 + $0xf8] sm:$0xff]  ;;  %v315_v10 = vld [vmem:[#allocation12 + $0x130] sm:$0xff] }
  0x5a   : > { %230 = vmatpush.msra.mxu0 %v167_v46  ;;  %346 = vmatpush.msra.mxu3 %v283_v47  ;;  %v175_v11 = vld [vmem:[#allocation10 + $0x70] sm:$0xff]  ;;  %v305_v12 = vld [vmem:[#allocation12 + $0xe0] sm:$0xff]  ;;  %v312_v13 = vld [vmem:[#allocation12 + $0x118] sm:$0xff] }
  0x5b   : > { %249 = vmatpush.msra.mxu1 %v171_v48  ;;  %264 = vmatpush.msra.mxu2 %v187_v61  ;;  %v172_v14 = vld [vmem:[#allocation10 + $0x58] sm:$0xff]  ;;  %v302_v15 = vld [vmem:[#allocation12 + $0xc8] sm:$0xff]  ;;  %v309_v16 = vld [vmem:[#allocation12 + $0x100] sm:$0xff] }
  0x5c   : > { %231 = vmatpush.msra.mxu0 %v164_v50  ;;  %347 = vmatpush.msra.mxu3 %v280_v51  ;;  %v169_v17 = vld [vmem:[#allocation10 + $0x40] sm:$0xff]  ;;  %v299_v18 = vld [vmem:[#allocation12 + $0xb0] sm:$0xff]  ;;  %v306_v19 = vld [vmem:[#allocation12 + $0xe8] sm:$0xff] }
  0x5d   : > { %250 = vmatpush.msra.mxu1 %v168_v53  ;;  %265 = vmatpush.msra.mxu2 %v184_v1  ;;  %v166_v20 = vld [vmem:[#allocation10 + $0x28] sm:$0xff]  ;;  %v296_v21 = vld [vmem:[#allocation12 + $0x98] sm:$0xff]  ;;  %v303_v22 = vld [vmem:[#allocation12 + $0xd0] sm:$0xff] }
  0x5e   : > { %232 = vmatpush.msra.mxu0 %v161_v55  ;;  %348 = vmatpush.msra.mxu3 %v277_v56  ;;  %v163_v23 = vld [vmem:[#allocation10 + $0x10] sm:$0xff]  ;;  %v293_v24 = vld [vmem:[#allocation12 + $0x80] sm:$0xff]  ;;  %v300_v25 = vld [vmem:[#allocation12 + $0xb8] sm:$0xff] }
  0x5f   : > { %349 = vmatmul.f32.vlgmr.msra.gmra.mxu3 %v746_v2  ;;  %251 = vmatpush.msra.mxu1 %v165_v59  ;;  %v290_v26 = vld [vmem:[#allocation12 + $0x68] sm:$0xff]  ;;  %v297_v27 = vld [vmem:[#allocation12 + $0xa0] sm:$0xff]  ;;  %v287_v28 = vld [vmem:[#allocation12 + $0x50] sm:$0xff] }
  0x60   : > { %353 = vmatpush.msrb.mxu0 %v323_v57  ;;  %266 = vmatpush.msra.mxu2 %v181_v5  ;;  %v294_v29 = vld [vmem:[#allocation12 + $0x88] sm:$0xff]  ;;  %v284_v30 = vld [vmem:[#allocation12 + $0x38] sm:$0xff]  ;;  %v291_v31 = vld [vmem:[#allocation12 + $0x70] sm:$0xff] }
  0x61   : > { %233 = vmatmul.f32.vlgmr.msra.gmra.mxu0 %v878_v58  ;;  %252 = vmatpush.msra.mxu1 %v162_v62  ;;  %v281_v32 = vld [vmem:[#allocation12 + $0x20] sm:$0xff]  ;;  %v288_v33 = vld [vmem:[#allocation12 + $0x58] sm:$0xff]  ;;  %v278_v34 = vld [vmem:[#allocation12 + $0x8] sm:$0xff] }
  0x62   : > { %354 = vmatpush.msrb.mxu0 %v320_v60  ;;  %253 = vmatmul.f32.vlgmr.msra.gmra.mxu1 %v878_v58  ;;  %v285_v35 = vld [vmem:[#allocation12 + $0x40] sm:$0xff]  ;;  %v282_v36 = vld [vmem:[#allocation12 + $0x28] sm:$0xff]  ;;  %v279_v37 = vld [vmem:[#allocation12 + $0x10] sm:$0xff] }
  0x63   : > { %373 = vmatpush.msrb.mxu1 %v324_v0  ;;  %267 = vmatpush.msra.mxu2 %v178_v8  ;;  %v209_v38 = vld [vmem:[%s905_s4] sm:$0x7]  ;;  %v325_v39 = vld [vmem:[#allocation13] sm:$0x7] }
  0x64   : > { %355 = vmatpush.msrb.mxu0 %v317_v63  ;;  %v211_v40 = vperm.slane %v209_v38, 0  ;;  %v327_v42 = vperm.slane %v325_v39, 0  ;;  %v212_v50 = vperm.slane %v209_v38, 1  ;;  %v328_v53 = vperm.slane %v325_v39, 1 }
  0x65   : > { %374 = vmatpush.msrb.mxu1 %v321_v4  ;;  %268 = vmatpush.msra.mxu2 %v175_v11  ;;  %v329_v1 = vperm.slane %v325_v39, 2 }
  0x66   : > { %356 = vmatpush.msrb.mxu0 %v314_v3 }
  0x67   : > { %375 = vmatpush.msrb.mxu1 %v318_v7  ;;  %269 = vmatpush.msra.mxu2 %v172_v14 }
  0x68   : > { %357 = vmatpush.msrb.mxu0 %v311_v6 }
  0x69   : > { %376 = vmatpush.msrb.mxu1 %v315_v10  ;;  %270 = vmatpush.msra.mxu2 %v169_v17 }
  0x6a   : > { %358 = vmatpush.msrb.mxu0 %v308_v9  ;;  %v213_v9 = vperm.slane %v209_v38, 2 }
  0x6b   : > { %377 = vmatpush.msrb.mxu1 %v312_v13  ;;  %271 = vmatpush.msra.mxu2 %v166_v20 }
  0x6c   : > { %359 = vmatpush.msrb.mxu0 %v305_v12 }
  0x6d   : > { %378 = vmatpush.msrb.mxu1 %v309_v16  ;;  %272 = vmatpush.msra.mxu2 %v163_v23 }
  0x6e   : > { %360 = vmatpush.msrb.mxu0 %v302_v15  ;;  %273 = vmatmul.f32.vlgmr.msra.gmra.mxu2 %v878_v58 }
  0x6f   : > { %379 = vmatpush.msrb.mxu1 %v306_v19 }
  0x70   : > { %361 = vmatpush.msrb.mxu0 %v299_v18 }
  0x71   : > { %380 = vmatpush.msrb.mxu1 %v303_v22 }
  0x72   : > { %362 = vmatpush.msrb.mxu0 %v296_v21 }
  0x73   : > { %381 = vmatpush.msrb.mxu1 %v300_v25 }
  0x74   : > { %363 = vmatpush.msrb.mxu0 %v293_v24 }
  0x75   : > { %382 = vmatpush.msrb.mxu1 %v297_v27 }
  0x76   : > { %364 = vmatpush.msrb.mxu0 %v290_v26 }
  0x77   : > { %383 = vmatpush.msrb.mxu1 %v294_v29 }
  0x78   : > { %365 = vmatpush.msrb.mxu0 %v287_v28 }
  0x79   : > { %384 = vmatpush.msrb.mxu1 %v291_v31 }
  0x7a   : > { %366 = vmatpush.msrb.mxu0 %v284_v30 }
  0x7b   : > { %385 = vmatpush.msrb.mxu1 %v288_v33 }
  0x7c   : > { %367 = vmatpush.msrb.mxu0 %v281_v32 }
  0x7d   : > { %386 = vmatpush.msrb.mxu1 %v285_v35 }
  0x7e   : > { %368 = vmatpush.msrb.mxu0 %v278_v34 }
  0x7f   : > { %369 = vmatmul.f32.vlgmr.msrb.gmra.mxu0 %v746_v2  ;;  %387 = vmatpush.msrb.mxu1 %v282_v36 }
  0x81   : > { %388 = vmatpush.msrb.mxu1 %v279_v37 }
  0x82   : > { %389 = vmatmul.f32.vlgmr.msrb.gmra.mxu1 %v746_v2 }
  0xde   : > { %v234_v41 = vpop.f32.mrf.mxu0 }
  0xdf   : > { %v235_v43 = vadd.f32 %v234_v41, %v211_v40  ;;  %v254_v51 = vpop.f32.mrf.mxu1 }
  0xe0   : > { %v255_v55 = vadd.f32 %v254_v51, %v212_v50 }
  0xe2   : > { %v350_v44 = vpop.f32.mrf.mxu3 }
  0xe3   : > { %v351_v45 = vadd.f32 %v350_v44, %v327_v42 }
  0xe5   : > { %v393_v46 = vadd.f32 %v351_v45, %v235_v43 }
  0xe7   : > { %v493_v47 = vmul.f32 -1.442695, %v393_v46 }
  0xe9   : > { %530 = vpow2.f32 %v493_v47 }
  0xef   : > { %v531_v48 = vpop.eup %530 }
  0xf0   : > { %v397_v49 = vadd.f32 1.0, %v531_v48 }
  0xf1   : > { %v274_v11 = vpop.f32.mrf.mxu2 }
  0xf2   : > { %532 = vrcp.f32 %v397_v49  ;;  %vm403_vm0 = vweird.f32 %v397_v49  ;;  %v409_v62 = vand.u32 2147483648, %v397_v49  ;;  %v407_v0 = vand.u32 2147483647, %v397_v49 }
  0xf3   : > { %v275_v13 = vadd.f32 %v274_v11, %v213_v9 }
  0xf4   : > { %v410_v5 = vor.u32 1.1754944e-38, %v409_v62  ;;  %vm408_vm3 = vcmp.eq.f32.partialorder %v407_v0, 8.507059e+37 }
  0xf8   : > { %v533_v52 = vpop.eup %532 }
  0xf9   : > { %v399_v54 = vmul.f32 %v533_v52, %v397_v49  ;;  %vm404_vm1 = vweird.f32 %v533_v52 }
  0xfa   : > { %vm405_vm2 = vmor %vm403_vm0, %vm404_vm1 }
  0xfb   : > { %v400_v58 = vsub.f32 1.0, %v399_v54 }
  0xfc   : > { %v370_v56 = vpop.f32.mrf.mxu0 }
  0xfd   : > { %v371_v57 = vadd.f32 %v370_v56, %v328_v53  ;;  %v401_v61 = vmul.f32 %v533_v52, %v400_v58 }
  0xff   : > { %v413_v59 = vadd.f32 %v371_v57, %v255_v55  ;;  %v402_v63 = vadd.f32 %v533_v52, %v401_v61  ;;  %v390_v4 = vpop.f32.mrf.mxu1 }
 0x100   : > { %v391_v8 = vadd.f32 %v390_v4, %v329_v1 }
 0x101   : > { %v494_v60 = vmul.f32 -1.442695, %v413_v59  ;;  %v406_v7 = vsel %vm405_vm2, %v533_v52, %v402_v63 }
 0x102   : > { %v411_v10 = vsel %vm408_vm3, %v410_v5, %v406_v7 }
 0x103   : > { %534 = vpow2.f32 %v494_v60  ;;  %v433_v12 = vmul.f32 %v411_v10, %v391_v8 }
 0x105   : > { %v434_v16 = vadd.f32 %v433_v12, %v275_v13 }
 0x109   : > { %v535_v3 = vpop.eup %534 }
 0x10a   : > { %v417_v6 = vadd.f32 1.0, %v535_v3 }
 0x10c   : > { %536 = vrcp.f32 %v417_v6  ;;  %v429_v18 = vand.u32 2147483648, %v417_v6  ;;  %v427_v20 = vand.u32 2147483647, %v417_v6  ;;  %vm423_vm5 = vweird.f32 %v417_v6 }
 0x10d   : > { %538 = vtanh.f32 %v434_v16 }
 0x10e   : > { %v430_v22 = vor.u32 1.1754944e-38, %v429_v18  ;;  %vm428_vm7 = vcmp.eq.f32.partialorder %v427_v20, 8.507059e+37 }
 0x112   : > { %v537_v14 = vpop.eup %536 }
 0x113   : > { %v419_v15 = vmul.f32 %v537_v14, %v417_v6  ;;  %vm424_vm4 = vweird.f32 %v537_v14  ;;  %v539_v26 = vpop.eup %538 }
 0x114   : > { %vm425_vm6 = vmor %vm423_vm5, %vm424_vm4 }
 0x115   : > { %v420_v17 = vsub.f32 1.0, %v419_v15 }
 0x117   : > { %v421_v19 = vmul.f32 %v537_v14, %v420_v17 }
 0x119   : > { %v422_v21 = vadd.f32 %v537_v14, %v421_v19 }
 0x11b   : > { %v426_v23 = vsel %vm425_vm6, %v537_v14, %v422_v21 }
 0x11c   : > { %v431_v24 = vsel %vm428_vm7, %v430_v22, %v426_v23 }
 0x11d   : > { %v436_v25 = vsub.f32 1.0, %v431_v24  ;;  %v438_v28 = vmul.f32 %v746_v2, %v431_v24 }
 0x11f   : > { %v437_v27 = vmul.f32 %v539_v26, %v436_v25  ;;  %127 = sbr.rel (!%p492_p5) target bundleno = 44 (0x2c), region = 91 }
 0x121   : > { %v439_v29 = vadd.f32 %v438_v28, %v437_v27  }
 0x123   : > { %441 = vst [vmem:[%s440_s11] sm:$0x1] %v439_v29  ;;  %v909_v2 = vmov %v439_v29 }
 0x124   :  { %442 = vst [vmem:[#allocation2] sm:$0x1] %v439_v29  ;;  %455 = dma.vmem_to_hbm [thread:$0]  %s448_s17, 256, %s450_s15, [#allocation9], %s762_s2, %s762_s2, %s763_s14  }
 0x125   :  { %742 = dma.done.wait [#allocation9], 256  }
 0x126   :  { %743 = vsyncadd [#allocation9], 4294967040 }
 0x127   :  { %460 = vsyncpa [#allocation8], 1 }
 0x128   :  { %461 = vsyncpa [#allocation11], 1 }
 0x129   :  { %462 = vsyncpa [#allocation14], 1 }
 0x12a   :  { %463 = vsyncpa [#allocation9], 1 }
 0x12b   :  { %464 = vsyncmov [#allocation4] }
 0x12e   :  { %s465_s18 = vpop.sfrf %464 }
 0x12f   :  { %p495_p0 = scmp.ne.s32.totalorder %s465_s18, 0 }
 0x131   :  { %469 = shalt.err (%p495_p0)  }
 0x132   :  { %471 = vsyncmov [#allocation4 + $0x1] }
 0x135   :  { %s472_s4 = vpop.sfrf %471 }
 0x136   :  { %p496_p1 = scmp.ne.s32.totalorder %s472_s4, 0 }
 0x138   :  { %476 = shalt.err (%p496_p1)  }

</bundles_post_ra>
